<compile_context>
chip_gen: v5e
topology: v5e:2x2
jax: 0.10.0
libtpu: 0.0.40
codegen_flags: <defaults>
</compile_context>

<pallas_src>
import functools

import jax
import jax.numpy as jnp
from jax import lax
from jax.experimental import pallas as pl
from jax.experimental.pallas import tpu as pltpu


def _vmem_budget_bytes():
    """Returns (scoped vmem limit, per-x-block f32 byte cap) by TPU generation."""
    try:
        info = pltpu.get_tpu_info()
        phys = getattr(info, "vmem_capacity_bytes", 64 << 20)
    except Exception:  # pragma: no cover - conservative fallback off-TPU
        phys = 64 << 20
    if phys >= (100 << 20):        # v5e / v6e: 128 MiB physical VMEM
        return 64 << 20, 8 << 20   # 64 MiB scoped, ~8 MiB per f32 logits block
    return 32 << 20, 4 << 20       # v7x: 64 MiB physical -> 32 MiB scoped, ~4 MiB/block


def _custom_loss_kernel(x_ref, t_ref, o_ref, *, total_rows, sum_on_mxu):
    # x_ref: (TB, C) logits (HBM dtype), t_ref: (TB, 1) int32 targets.
    tb, c = x_ref.shape

    x = x_ref[...].astype(jnp.float32)                   # single upcast per tile
    t = t_ref[...]                                        # (TB, 1) int32

    # Numerically-stable exp along the class (lane) axis.
    m = jnp.max(x, axis=-1, keepdims=True)                # (TB, 1)   XLU reduce
    e = jnp.exp(x - m)                                    # (TB, C)   EUP

    # Non-target exp mass via the inverted one-hot mask — no lane gather, no
    # full-probs materialization, no 1 - p_t cancellation.
    col = lax.broadcasted_iota(jnp.int32, x.shape, 1)     # (TB, C)
    non_target = jnp.where(col == t, 0.0, e)              # (TB, C)

    if sum_on_mxu:
        # Off-load both class-axis sums to the (otherwise idle) MXU; HIGHEST
        # precision keeps f32 accuracy (ones are exact in bf16 sub-passes).
        ones = jnp.ones((c, 128), dtype=jnp.float32)
        denom = jnp.dot(e, ones, precision=lax.Precision.HIGHEST,
                        preferred_element_type=jnp.float32)[:, :1]       # (TB, 1)
        s = jnp.dot(non_target, ones, precision=lax.Precision.HIGHEST,
                    preferred_element_type=jnp.float32)[:, :1]           # (TB, 1)
    else:
        denom = jnp.sum(e, axis=-1, keepdims=True)                       # (TB, 1)
        s = jnp.sum(non_target, axis=-1, keepdims=True)                  # (TB, 1)

    # 0.5 * -log(1 - p_t) = 0.5 * (log(denom) - log(denom - e_t))
    loss = 0.5 * (jnp.log(denom) - jnp.log(s))                           # (TB, 1)

    # Mask rows past the true batch (Pallas-padded last block: load-bearing).
    row = pl.program_id(0) * tb + lax.broadcasted_iota(jnp.int32, (tb, 1), 0)
    loss = jnp.where(row < total_rows, loss, 0.0)

    # Per-tile partial sum written to a fully-tiled lane-dense (8, 128) block;
    # tiles stay independent so the grid axis is "parallel".
    psum = jnp.sum(loss)
    o_ref[...] = jnp.full(o_ref.shape, psum, dtype=jnp.float32)


def custom_loss(inputs, targets, is_pos, *, sum_on_mxu=True):
    """inputs: (B, C) float logits, targets: (B,) int, is_pos: (B,) float."""
    B, C = inputs.shape

    # Sublane alignment for clean packed layouts: 8 (f32), 16 (bf16), 32 (8-bit).
    itemsize = jnp.dtype(inputs.dtype).itemsize
    sub_align = max(8, 32 // max(1, itemsize))

    vmem_limit, x_block_cap = _vmem_budget_bytes()
    # Rows such that one f32-sized logits block stays under the per-buffer cap;
    # total working set ~ 6x that block (x dbl-buffer + in-kernel temporaries).
    cap_rows = max(sub_align, (x_block_cap // (C * 4)) // sub_align * sub_align)
    b_aligned = pl.cdiv(B, sub_align) * sub_align
    tb = min(b_aligned, cap_rows, 2048)
    if tb >= B:
        tb = B                      # single tile covering the whole batch
    num_tiles = pl.cdiv(B, tb)

    t = targets.astype(jnp.int32).reshape(B, 1)

    kernel = functools.partial(_custom_loss_kernel, total_rows=B,
                               sum_on_mxu=sum_on_mxu)

    partial_sums = pl.pallas_call(
        kernel,
        out_shape=jax.ShapeDtypeStruct((num_tiles, 8, 128), jnp.float32),
        grid=(num_tiles,),
        in_specs=[
            pl.BlockSpec((tb, C), lambda i: (i, 0)),
            pl.BlockSpec((tb, 1), lambda i: (i, 0)),
        ],
        out_specs=pl.BlockSpec((1, 8, 128), lambda i: (i, 0, 0)),
        compiler_params=pltpu.CompilerParams(
            dimension_semantics=("parallel",),     # megacore-shardable (v7x 2 TCs)
            vmem_limit_bytes=vmem_limit,
        ),
    )(inputs, t)

    # Final mean over the TRUE batch size; is_pos term added in the epilogue
    # (no class-axis interaction, so it never needed to enter the kernel).
    softmax_term = jnp.sum(partial_sums[:, 0, 0]) / B
    return softmax_term + jnp.mean(1.0 - is_pos.astype(jnp.float32))


def custom_loss_ref(inputs, targets, is_pos):
    # Pure-JAX reference for verification.
    probs = jax.nn.softmax(inputs.astype(jnp.float32), axis=-1)
    p_t = probs[jnp.arange(inputs.shape[0]), targets]
    loss = 0.5 * (-jnp.log(1.0 - p_t)) + (1.0 - is_pos.astype(jnp.float32))
    return jnp.mean(loss)


if __name__ == "__main__":
    key = jax.random.PRNGKey(0)
    k1, k2, k3 = jax.random.split(key, 3)

    B, C = 8, 128  # small: batch=8 samples, 128 classes (lane-friendly)
    inputs = jax.random.normal(k1, (B, C), dtype=jnp.float32)
    targets = jax.random.randint(k2, (B,), 0, C, dtype=jnp.int32)
    is_pos = jax.random.bernoulli(k3, 0.5, (B,)).astype(jnp.float32)

    out = custom_loss(inputs, targets, is_pos)
    jax.block_until_ready(out)

    ref = custom_loss_ref(inputs, targets, is_pos)
    assert jnp.allclose(out, ref, rtol=1e-5, atol=1e-5), (out, ref)

    print("KERNEL_OK")
</pallas_src>

<mosaic_0001>
module attributes {stable_mosaic.version = 11 : i64} {
  func.func @_custom_loss_kernel(%arg0: i32, %arg1: memref<8x128xf32, #tpu.memory_space<vmem>>, %arg2: memref<8x1xi32, #tpu.memory_space<vmem>>, %arg3: memref<1x8x128xf32, #tpu.memory_space<vmem>>) attributes {dimension_semantics = [#tpu.dimension_semantics<parallel>], iteration_bounds = array<i64: 1>, scalar_prefetch = 0 : i64, scratch_operands = 0 : i64, tpu.core_type = #tpu.core_type<tc>, window_params = [{transform_indices = @transform_0, window_bounds = array<i64: 8, 128>}, {transform_indices = @transform_1, window_bounds = array<i64: 8, 1>}, {transform_indices = @transform_2, window_bounds = array<i64: 1, 8, 128>}]} {
    %c0 = arith.constant 0 : index
    %c0_0 = arith.constant 0 : index
    %0 = vector.load %arg1[%c0, %c0_0] : memref<8x128xf32, #tpu.memory_space<vmem>>, vector<8x128xf32>
    %c0_1 = arith.constant 0 : index
    %c0_2 = arith.constant 0 : index
    %1 = vector.load %arg2[%c0_1, %c0_2] : memref<8x1xi32, #tpu.memory_space<vmem>>, vector<8x1xi32>
    %cst = arith.constant dense<0xFF800000> : vector<8xf32>
    %2 = vector.multi_reduction <maximumf>, %0, %cst [1] : vector<8x128xf32> to vector<8xf32>
    %3 = vector.shape_cast %2 : vector<8xf32> to vector<8x1xf32>
    %4 = vector.broadcast %3 : vector<8x1xf32> to vector<8x128xf32>
    %5 = arith.subf %0, %4 : vector<8x128xf32>
    %6 = math.exp %5 : vector<8x128xf32>
    %7 = tpu.iota {dimensions = array<i32: 1>} : vector<8x128xi32>
    %8 = vector.broadcast %1 : vector<8x1xi32> to vector<8x128xi32>
    %9 = arith.cmpi eq, %7, %8 : vector<8x128xi32>
    %cst_3 = arith.constant 0.000000e+00 : f32
    %10 = vector.broadcast %cst_3 : f32 to vector<8x128xf32>
    %11 = arith.select %9, %10, %6 : vector<8x128xi1>, vector<8x128xf32>
    %cst_4 = arith.constant 1.000000e+00 : f32
    %12 = vector.broadcast %cst_4 : f32 to vector<128x128xf32>
    %cst_5 = arith.constant dense<0.000000e+00> : vector<8x128xf32>
    %13 = tpu.matmul %6, %12, %cst_5 {dimension_numbers = #tpu.dot_dimension_numbers<[1], [0], [0], [1], [0, 0, 1, 1], [], []>, precision = #tpu.contract_precision<fp32>} : vector<8x128xf32>, vector<128x128xf32>, vector<8x128xf32> -> vector<8x128xf32>
    %14 = vector.extract_strided_slice %13 {offsets = [0, 0], sizes = [8, 1], strides = [1, 1]} : vector<8x128xf32> to vector<8x1xf32>
    %cst_6 = arith.constant dense<0.000000e+00> : vector<8x128xf32>
    %15 = tpu.matmul %11, %12, %cst_6 {dimension_numbers = #tpu.dot_dimension_numbers<[1], [0], [0], [1], [0, 0, 1, 1], [], []>, precision = #tpu.contract_precision<fp32>} : vector<8x128xf32>, vector<128x128xf32>, vector<8x128xf32> -> vector<8x128xf32>
    %16 = vector.extract_strided_slice %15 {offsets = [0, 0], sizes = [8, 1], strides = [1, 1]} : vector<8x128xf32> to vector<8x1xf32>
    %17 = math.log %14 : vector<8x1xf32>
    %18 = math.log %16 : vector<8x1xf32>
    %19 = arith.subf %17, %18 : vector<8x1xf32>
    %cst_7 = arith.constant 5.000000e-01 : f32
    %20 = vector.broadcast %cst_7 : f32 to vector<8x1xf32>
    %21 = arith.mulf %20, %19 : vector<8x1xf32>
    %c8_i32 = arith.constant 8 : i32
    %22 = arith.muli %arg0, %c8_i32 : i32
    %23 = tpu.iota {dimensions = array<i32: 0>} : vector<8x1xi32>
    %24 = vector.broadcast %22 : i32 to vector<8x1xi32>
    %25 = arith.addi %24, %23 : vector<8x1xi32>
    %c8_i32_8 = arith.constant 8 : i32
    %26 = vector.broadcast %c8_i32_8 : i32 to vector<8x1xi32>
    %27 = arith.cmpi slt, %25, %26 : vector<8x1xi32>
    %cst_9 = arith.constant 0.000000e+00 : f32
    %28 = vector.broadcast %cst_9 : f32 to vector<8x1xf32>
    %29 = arith.select %27, %21, %28 : vector<8x1xi1>, vector<8x1xf32>
    %30 = vector.shape_cast %29 : vector<8x1xf32> to vector<1x8x1xf32>
    %cst_10 = arith.constant dense<0.000000e+00> : vector<1xf32>
    %31 = vector.multi_reduction <add>, %30, %cst_10 [1, 2] : vector<1x8x1xf32> to vector<1xf32>
    %32 = vector.shape_cast %31 : vector<1xf32> to vector<1x1x1xf32>
    %33 = vector.extract %32[0, 0, 0] : f32 from vector<1x1x1xf32>
    %34 = vector.broadcast %33 : f32 to vector<1x8x128xf32>
    %c0_11 = arith.constant 0 : index
    %c0_12 = arith.constant 0 : index
    %c0_13 = arith.constant 0 : index
    %35 = vector.load %arg3[%c0_11, %c0_12, %c0_13] : memref<1x8x128xf32, #tpu.memory_space<vmem>>, vector<1x8x128xf32>
    tpu.vector_store %arg3[%c0_11, %c0_12, %c0_13], %34 {strides = array<i32>} : memref<1x8x128xf32, #tpu.memory_space<vmem>>, vector<1x8x128xf32>,
    return
  }
  func.func @transform_0(%arg0: i32) -> (i32, i32) {
    %c0_i32 = arith.constant 0 : i32
    %c0_i32_0 = arith.constant 0 : i32
    return %arg0, %c0_i32 : i32, i32
  }
  func.func @transform_1(%arg0: i32) -> (i32, i32) {
    %c0_i32 = arith.constant 0 : i32
    %c0_i32_0 = arith.constant 0 : i32
    return %arg0, %c0_i32 : i32, i32
  }
  func.func @transform_2(%arg0: i32) -> (i32, i32, i32) {
    %c0_i32 = arith.constant 0 : i32
    %c0_i32_0 = arith.constant 0 : i32
    %c0_i32_1 = arith.constant 0 : i32
    return %arg0, %c0_i32, %c0_i32_0 : i32, i32, i32
  }
}

</mosaic_0001>

<bundles_post_ra>
// kernel: tpu_custom_call.1
= control target key start
LH: loop header
LB: loop body
LE: loop exit
PB: predicated region body
PF: predicated region fallthrough
CT: control target
= control target key end

     0   :  { %s501_s0 = inlined_call_operand.vmem [shape: f32[8,128], index: 0, kind: input, shape index: {}]   ;;  %s502_s1 = inlined_call_operand.vmem [shape: s32[8,1], index: 1, kind: input, shape index: {}]   ;;  %s503_s2 = inlined_call_operand.hbm [shape: f32[1,8,128], index: 2, kind: output, shape index: {}]  }
   0x1   :  { %v395_v0 = vld [vmem:[%s501_s0] sm:$0xff] }
   0x2   :  { %7 = vsyncpa [#allocation3], 0  ;;  %14 = vmax.xlane.f32.xlu0 %v395_v0  ;;  %v373_v1 = vmov 1.0   ;;  %v374_v2 = vmov 0   ;;  %v13_v3 = vld [vmem:[%s502_s1] sm:$0xff]  ;;  %v375_v4 = vmov 0.0   ;;  %v19_v10 = vlaneseq }
   0x3   :  { %94 = vmatpush.msra.mxu3 %v373_v1  ;;  %340 = vset.pattern.permute.xlu0 %v374_v2  ;;  %vm305_vm1 = vcmask 7168   ;;  %s376_s1 = smov [#allocation2]   ;;  %s325_s15 = sshll.u32 %s503_s2, 4  ;;  %s326_s15 = int_to_ptr.hbm [resolvable:$true] %s325_s15 }
   0x4   :  { %138 = vmatpush.msra.mxu2 %v373_v1  ;;  %26 = vmatpush.msra.mxu0 %v373_v1  ;;  %v20_v13 = vand.u32 127, %v19_v10  ;;  %s323_s12 = sshll.u32 %s376_s1, 4  ;;  %s324_s12 = int_to_ptr.vmem [resolvable:$true] %s323_s12 }
   0x5   :  { %95 = vmatpush.msra.mxu3 %v373_v1  ;;  %66 = vmatpush.msra.mxu1 %v375_v4 }
   0x6   :  { %139 = vmatpush.msra.mxu2 %v373_v1  ;;  %27 = vmatpush.msra.mxu0 %v373_v1 }
   0x7   :  { %96 = vmatpush.msra.mxu3 %v373_v1  ;;  %132 = vmatpush.msrb.mxu1 %v375_v4 }
   0x8   :  { %140 = vmatpush.msra.mxu2 %v373_v1  ;;  %28 = vmatpush.msra.mxu0 %v373_v1 }
   0x9   :  { %97 = vmatpush.msra.mxu3 %v373_v1 }
   0xa   :  { %141 = vmatpush.msra.mxu2 %v373_v1  ;;  %29 = vmatpush.msra.mxu0 %v373_v1 }
   0xb   :  { %98 = vmatpush.msra.mxu3 %v373_v1 }
   0xc   :  { %142 = vmatpush.msra.mxu2 %v373_v1  ;;  %30 = vmatpush.msra.mxu0 %v373_v1 }
   0xd   :  { %99 = vmatpush.msra.mxu3 %v373_v1 }
   0xe   :  { %143 = vmatpush.msra.mxu2 %v373_v1  ;;  %31 = vmatpush.msra.mxu0 %v373_v1 }
   0xf   :  { %100 = vmatpush.msra.mxu3 %v373_v1 }
  0x10   :  { %144 = vmatpush.msra.mxu2 %v373_v1  ;;  %32 = vmatpush.msra.mxu0 %v373_v1 }
  0x11   :  { %101 = vmatpush.msra.mxu3 %v373_v1 }
  0x12   :  { %145 = vmatpush.msra.mxu2 %v373_v1  ;;  %33 = vmatpush.msra.mxu0 %v373_v1 }
  0x13   :  { %102 = vmatpush.msra.mxu3 %v373_v1 }
  0x14   :  { %146 = vmatpush.msra.mxu2 %v373_v1  ;;  %34 = vmatpush.msra.mxu0 %v373_v1 }
  0x15   :  { %103 = vmatpush.msra.mxu3 %v373_v1 }
  0x16   :  { %147 = vmatpush.msra.mxu2 %v373_v1  ;;  %22 = vperm.xlu0 %340, %v13_v3  }
  0x17   :  { %104 = vmatpush.msra.mxu3 %v373_v1  ;;  %35 = vmatpush.msra.mxu0 %v373_v1 }
  0x18   :  { %148 = vmatpush.msra.mxu2 %v373_v1 }
  0x19   :  { %105 = vmatpush.msra.mxu3 %v373_v1  ;;  %36 = vmatpush.msra.mxu0 %v373_v1 }
  0x1a   :  { %149 = vmatpush.msra.mxu2 %v373_v1 }
  0x1b   :  { %106 = vmatpush.msra.mxu3 %v373_v1  ;;  %37 = vmatpush.msra.mxu0 %v373_v1 }
  0x1c   :  { %150 = vmatpush.msra.mxu2 %v373_v1 }
  0x1d   :  { %107 = vmatpush.msra.mxu3 %v373_v1  ;;  %38 = vmatpush.msra.mxu0 %v373_v1 }
  0x1e   :  { %151 = vmatpush.msra.mxu2 %v373_v1 }
  0x1f   :  { %108 = vmatpush.msra.mxu3 %v373_v1  ;;  %39 = vmatpush.msra.mxu0 %v373_v1 }
  0x20   :  { %152 = vmatpush.msra.mxu2 %v373_v1 }
  0x21   :  { %109 = vmatpush.msra.mxu3 %v373_v1  ;;  %40 = vmatpush.msra.mxu0 %v373_v1 }
  0x22   :  { %153 = vmatpush.msra.mxu2 %v373_v1 }
  0x23   :  { %271 = vmatpush.msrb.mxu3 %v373_v1  ;;  %41 = vmatpush.msra.mxu0 %v373_v1 }
  0x24   :  { %227 = vmatpush.msrb.mxu2 %v373_v1 }
  0x25   :  { %272 = vmatpush.msrb.mxu3 %v373_v1  ;;  %87 = vmatpush.msrb.mxu0 %v375_v4 }
  0x26   :  { %228 = vmatpush.msrb.mxu2 %v373_v1 }
  0x27   :  { %273 = vmatpush.msrb.mxu3 %v373_v1 }
  0x28   :  { %229 = vmatpush.msrb.mxu2 %v373_v1 }
  0x29   :  { %274 = vmatpush.msrb.mxu3 %v373_v1 }
  0x2a   :  { %230 = vmatpush.msrb.mxu2 %v373_v1 }
  0x2b   :  { %275 = vmatpush.msrb.mxu3 %v373_v1 }
  0x2c   :  { %231 = vmatpush.msrb.mxu2 %v373_v1 }
  0x2d   :  { %276 = vmatpush.msrb.mxu3 %v373_v1 }
  0x2e   :  { %232 = vmatpush.msrb.mxu2 %v373_v1 }
  0x2f   :  { %277 = vmatpush.msrb.mxu3 %v373_v1 }
  0x30   :  { %233 = vmatpush.msrb.mxu2 %v373_v1 }
  0x31   :  { %278 = vmatpush.msrb.mxu3 %v373_v1 }
  0x32   :  { %234 = vmatpush.msrb.mxu2 %v373_v1 }
  0x33   :  { %279 = vmatpush.msrb.mxu3 %v373_v1 }
  0x34   :  { %235 = vmatpush.msrb.mxu2 %v373_v1 }
  0x35   :  { %280 = vmatpush.msrb.mxu3 %v373_v1 }
  0x36   :  { %236 = vmatpush.msrb.mxu2 %v373_v1 }
  0x37   :  { %281 = vmatpush.msrb.mxu3 %v373_v1 }
  0x38   :  { %237 = vmatpush.msrb.mxu2 %v373_v1 }
  0x39   :  { %282 = vmatpush.msrb.mxu3 %v373_v1 }
  0x3a   :  { %238 = vmatpush.msrb.mxu2 %v373_v1 }
  0x3b   :  { %283 = vmatpush.msrb.mxu3 %v373_v1 }
  0x3c   :  { %239 = vmatpush.msrb.mxu2 %v373_v1 }
  0x3d   :  { %284 = vmatpush.msrb.mxu3 %v373_v1 }
  0x3e   :  { %240 = vmatpush.msrb.mxu2 %v373_v1 }
  0x3f   :  { %285 = vmatpush.msrb.mxu3 %v373_v1 }
  0x40   :  { %241 = vmatpush.msrb.mxu2 %v373_v1 }
  0x41   :  { %286 = vmatpush.msrb.mxu3 %v373_v1 }
  0x42   :  { %242 = vmatpush.msrb.mxu2 %v373_v1 }
  0x75   :  { %v15_v5 = vpop.xlane.xlu0 %14 }
  0x76   :  { %v16_v6 = vsub.f32 %v395_v0, %v15_v5 }
  0x78   :  { %v17_v7 = vmul.f32 1.442695, %v16_v6 }
  0x7a   :  { %341 = vpow2.f32 %v17_v7 }
  0x80   :  { %v342_v8 = vpop.eup %341 }
  0x81   :  { %v42_v9 = vand.u32 4294901760, %v342_v8 }
  0x83   :  { %68 = vmatmul.f32.vlgmr.msra.gmra.mxu1 %v42_v9  ;;  %155 = vmatmul.f32.vlgmr.msra.gmra.mxu2 %v42_v9  ;;  %v43_v11 = vsub.f32 %v342_v8, %v42_v9 }
  0x84   :  { %159 = vmatpush.msra.mxu1 %v373_v1 }
  0x85   :  { %v44_v12 = vand.u32 4294901760, %v43_v11 }
  0x86   :  { %160 = vmatpush.msra.mxu1 %v373_v1 }
  0x87   :  { %113 = vmatmul.f32.vlgmr.msra.gmra.mxu3 %v44_v12  ;;  %v45_v14 = vsub.f32 %v43_v11, %v44_v12 }
  0x88   :  { %161 = vmatpush.msra.mxu1 %v373_v1  ;;  %v23_v15 = vpop.permute.xlu0 %22 }
  0x89   :  { %vm24_vm0 = vcmp.eq.s32.totalorder %v20_v13, %v23_v15  ;;  %v46_v16 = vand.u32 4294901760, %v45_v14 }
  0x8a   :  { %v25_v17 = vsel %vm24_vm0, 0.0, %v342_v8  ;;  %162 = vmatpush.msra.mxu1 %v373_v1 }
  0x8b   :  { %v175_v18 = vand.u32 4294901760, %v25_v17  ;;  %47 = vmatmul.f32.vlgmr.msra.gmra.mxu0 %v46_v16  ;;  %134 = vmatmul.f32.vlgmr.msrb.gmra.mxu1 %v42_v9 }
  0x8c   :  { %163 = vmatpush.msra.mxu1 %v373_v1  ;;  %199 = vmatpush.msra.mxu0 %v375_v4 }
  0x8d   :  { %v176_v19 = vsub.f32 %v25_v17, %v175_v18 }
  0x8e   :  { %164 = vmatpush.msra.mxu1 %v373_v1 }
  0x8f   :  { %288 = vmatmul.f32.vlgmr.msrb.gmra.mxu3 %v175_v18  ;;  %v177_v20 = vand.u32 4294901760, %v176_v19 }
  0x90   :  { %165 = vmatpush.msra.mxu1 %v373_v1 }
  0x91   :  { %246 = vmatmul.f32.vlgmr.msrb.gmra.mxu2 %v177_v20  ;;  %v178_v21 = vsub.f32 %v176_v19, %v177_v20 }
  0x92   :  { %166 = vmatpush.msra.mxu1 %v373_v1 }
  0x93   :  { %90 = vmatmul.f32.vlgmr.msrb.gmra.mxu0 %v43_v11  ;;  %v179_v22 = vand.u32 4294901760, %v178_v21 }
  0x94   :  { %167 = vmatpush.msra.mxu1 %v373_v1  ;;  %265 = vmatpush.msrb.mxu0 %v375_v4 }
  0x96   :  { %168 = vmatpush.msra.mxu1 %v373_v1 }
  0x98   :  { %169 = vmatpush.msra.mxu1 %v373_v1 }
  0x9a   :  { %170 = vmatpush.msra.mxu1 %v373_v1 }
  0x9b   :  { %201 = vmatmul.f32.vlgmr.msra.gmra.mxu0 %v175_v18 }
  0x9c   :  { %171 = vmatpush.msra.mxu1 %v373_v1 }
  0x9e   :  { %172 = vmatpush.msra.mxu1 %v373_v1 }
  0xa0   :  { %173 = vmatpush.msra.mxu1 %v373_v1 }
  0xa2   :  { %174 = vmatpush.msra.mxu1 %v373_v1 }
  0xa3   :  { %180 = vmatmul.f32.vlgmr.msra.gmra.mxu1 %v179_v22  ;;  %267 = vmatmul.f32.vlgmr.msrb.gmra.mxu0 %v175_v18 }
  0xa4   :  { %220 = vmatpush.msrb.mxu1 %v375_v4 }
  0xab   :  { %223 = vmatmul.f32.vlgmr.msrb.gmra.mxu1 %v176_v19 }
 0x100   :  { %v69_v23 = vpop.f32.mrf.mxu1 }
 0x106   :  { %v156_v30 = vpop.f32.mrf.mxu2 }
 0x108   :  { %v48_v24 = vpop.f32.mrf.mxu0  ;;  %v135_v25 = vpop.f32.mrf.mxu1 }
 0x109   :  { %v70_v27 = vadd.f32 %v69_v23, %v48_v24 }
 0x10a   :  { %v114_v31 = vpop.f32.mrf.mxu3 }
 0x110   :  { %v91_v26 = vpop.f32.mrf.mxu0 }
 0x111   :  { %v92_v28 = vadd.f32 %v91_v26, %v70_v27 }
 0x112   :  { %v289_v43 = vpop.f32.mrf.mxu3 }
 0x113   :  { %v115_v33 = vadd.f32 %v114_v31, %v92_v28 }
 0x114   :  { %v247_v38 = vpop.f32.mrf.mxu2 }
 0x115   :  { %v136_v34 = vadd.f32 %v135_v25, %v115_v33 }
 0x117   :  { %v157_v40 = vadd.f32 %v156_v30, %v136_v34 }
 0x118   :  { %v202_v32 = vpop.f32.mrf.mxu0 }
 0x119   :  { %343 = vlog2.f32 %v157_v40 }
 0x11f   :  { %v344_v45 = vpop.eup %343 }
 0x120   :  { %v181_v29 = vpop.f32.mrf.mxu1  ;;  %v268_v41 = vpop.f32.mrf.mxu0  ;;  %v293_v47 = vmul.f32 0.6931472, %v344_v45 }
 0x121   :  { %v203_v35 = vadd.f32 %v202_v32, %v181_v29 }
 0x128   :  { %v224_v36 = vpop.f32.mrf.mxu1 }
 0x129   :  { %v225_v37 = vadd.f32 %v224_v36, %v203_v35 }
 0x12b   :  { %v248_v39 = vadd.f32 %v247_v38, %v225_v37 }
 0x12d   :  { %v269_v42 = vadd.f32 %v268_v41, %v248_v39 }
 0x12f   :  { %v290_v44 = vadd.f32 %v289_v43, %v269_v42 }
 0x131   :  { %345 = vlog2.f32 %v290_v44 }
 0x137   :  { %v346_v46 = vpop.eup %345 }
 0x138   :  { %v295_v48 = vmul.f32 0.6931472, %v346_v46 }
 0x13a   :  { %v296_v49 = vsub.f32 %v293_v47, %v295_v48 }
 0x13c   :  { %v297_v50 = vmul.f32 0.5, %v296_v49 }
 0x13e   :  { %v306_v51 = vsel %vm305_vm1, %v297_v50, 0.0 }
 0x13f   :  { %307 = vadd.xlane.f32.xlu1 %v306_v51 }
 0x1b2   :  { %v308_v52 = vpop.xlane.xlu1 %307 }
 0x1b3   :  { %v309_v53 = vrot.slane %v308_v52, 4 }
 0x1b5   :  { %v310_v54 = vadd.f32 %v309_v53, %v308_v52 }
 0x1b7   :  { %v311_v55 = vrot.slane %v310_v54, 2 }
 0x1b9   :  { %v312_v56 = vadd.f32 %v311_v55, %v310_v54 }
 0x1bb   :  { %v313_v57 = vrot.slane %v312_v56, 1 }
 0x1bd   :  { %v314_v58 = vadd.f32 %v313_v57, %v312_v56 }
 0x1bf   :  { %334 = vpush %v314_v58 }
 0x1f0   :  { %s335_s16 = spop %334 }
 0x1f1   :  { %v316_v59 = vstv %s335_s16 }
 0x1f2   :  { %317 = vst [vmem:[#allocation2] sm:$0xff] %v316_v59 }
 0x1f3   :  { %328 = dma.vmem_to_hbm [thread:$0]  %s324_s12, 128, %s326_s15, [#allocation3]  }
 0x1f4   :  { %371 = dma.done.wait [#allocation3], 128  }
 0x1f5   :  { %372 = vsyncadd [#allocation3], 4294967168 }
 0x1f6   :  { %333 = vsyncpa [#allocation3], 1 }

</bundles_post_ra>
